<compile_context>
chip_gen: v7x
topology: tpu7x:2x2x1
jax: 0.10.0
libtpu: 0.0.40
codegen_flags: <defaults>
</compile_context>

<pallas_src>
import functools

import jax
import jax.numpy as jnp
from jax.experimental import pallas as pl
from jax.experimental.pallas import tpu as pltpu


def _round_up(x: int, m: int) -> int:
    return (x + m - 1) // m * m


def _value_kernel(xT_ref, w1_ref, b1_ref, w2_ref, b2_ref, w3_ref, b3_ref, o_ref):
    # xT : (S_pad, TB) bf16     w1 : (H, S_pad) bf16   b1 : (H, 1) f32
    # w2 : (H, H)      bf16     b2 : (H, 1)     f32
    # w3 : (1, H)      bf16     b3 : (1,)       f32  (SMEM scalar)
    # o  : (1, TB)     f32  (lane-dense output row, batch on lanes)
    x = xT_ref[...]                                                   # already bf16

    # fc1 + ReLU  -> (H, TB): MXU matmul, f32 accumulation, bias broadcast over lanes.
    h1 = jnp.dot(w1_ref[...], x, preferred_element_type=jnp.float32) + b1_ref[...]
    h1 = jnp.maximum(h1, 0.0).astype(jnp.bfloat16)

    # fc2 + ReLU  -> (H, TB)
    h2 = jnp.dot(w2_ref[...], h1, preferred_element_type=jnp.float32) + b2_ref[...]
    h2 = jnp.maximum(h2, 0.0).astype(jnp.bfloat16)

    # value head on the MXU: (1, H) x (H, TB) -> lane-dense (1, TB)
    v = jnp.dot(w3_ref[...], h2, preferred_element_type=jnp.float32) + b3_ref[0]
    o_ref[...] = v.astype(o_ref.dtype)


@functools.partial(jax.jit, static_argnames=("block_b",))
def value_network_forward(state, w1, b1, w2, b2, w3, b3, *, block_b=1024):
    """state: (B, S) f32.  w1:(H,S) bf16, b1:(H,1) f32, w2:(H,H) bf16, b2:(H,1) f32,
    w3:(1,H) bf16, b3:(1,) f32.  Returns (B, 1) f32."""
    B, S = state.shape
    H = w2.shape[0]

    # S is only padded to the bf16 sublane multiple (16), never to 128.
    S_pad = max(_round_up(S, 16), 16)

    # Lane-dense batch tile (multiple of 128).  Cap so the grid has >=2 steps whenever
    # B_pad >= 256 so both TensorCores get work on 2-TC parts (v7x); no cost on v5e/v6e.
    b_aligned = _round_up(B, 128)
    TB = min(_round_up(block_b, 128), b_aligned)
    if b_aligned >= 256:
        TB = min(TB, _round_up(b_aligned // 2, 128))
    B_pad = _round_up(B, TB)
    num_tiles = B_pad // TB

    # Tiny bf16 slab, batch on the lane axis.  XLA fuses pad+cast+transpose; the write is
    # S_pad*B_pad bf16 (~32 KB per 1024 batch rows), negligible vs. the old 128-row f32 slab.
    xT = jnp.pad(state, ((0, B_pad - B), (0, S_pad - S))).astype(jnp.bfloat16).T
    w1p = jnp.pad(w1.astype(jnp.bfloat16), ((0, 0), (0, S_pad - S)))   # (H, S_pad)
    w2b = w2.astype(jnp.bfloat16)                                      # (H, H)
    w3b = w3.astype(jnp.bfloat16).reshape(1, H)                        # (1, H) row
    b1f = b1.astype(jnp.float32).reshape(H, 1)
    b2f = b2.astype(jnp.float32).reshape(H, 1)
    b3f = b3.astype(jnp.float32).reshape(1)

    flops = 2 * B_pad * (S_pad * H + H * H + H)
    bytes_accessed = (S_pad * B_pad * 2                 # bf16 state slab
                      + H * S_pad * 2 + H * H * 2 + H * 2   # bf16 weights
                      + H * 4 * 2 + 4                   # f32 biases
                      + B_pad * 4)                      # f32 output row

    out = pl.pallas_call(
        _value_kernel,
        out_shape=jax.ShapeDtypeStruct((1, B_pad), jnp.float32),
        grid=(num_tiles,),
        in_specs=[
            pl.BlockSpec((S_pad, TB), lambda i: (0, i)),        # state tile (pipelined)
            pl.BlockSpec((H, S_pad), lambda i: (0, 0)),         # w1 (VMEM-resident)
            pl.BlockSpec((H, 1), lambda i: (0, 0)),             # b1
            pl.BlockSpec((H, H), lambda i: (0, 0)),             # w2
            pl.BlockSpec((H, 1), lambda i: (0, 0)),             # b2
            pl.BlockSpec((1, H), lambda i: (0, 0)),             # w3 row
            pl.BlockSpec(memory_space=pltpu.MemorySpace.SMEM),  # b3 scalar
        ],
        out_specs=pl.BlockSpec((1, TB), lambda i: (0, i)),      # lane-dense output slab
        compiler_params=pltpu.CompilerParams(
            dimension_semantics=("parallel",)),
        cost_estimate=pl.CostEstimate(
            flops=flops, transcendentals=0, bytes_accessed=bytes_accessed),
    )(xT, w1p, b1f, w2b, b2f, w3b, b3f)

    return out[0, :B].reshape(B, 1)


def init_params(key, state_dim, hidden=256):
    """nn.Linear-style init (U[-1/sqrt(fan_in), 1/sqrt(fan_in)]); bf16 weights, f32 biases.
    Weights stored PyTorch-style [out, in]; w3 is the (1, hidden) row of the value head."""
    ks = jax.random.split(key, 6)

    def linear(kw, kb, fan_in, fan_out):
        bound = 1.0 / jnp.sqrt(jnp.float32(fan_in))
        w = jax.random.uniform(kw, (fan_out, fan_in), jnp.float32, -bound, bound)
        b = jax.random.uniform(kb, (fan_out, 1), jnp.float32, -bound, bound)
        return w.astype(jnp.bfloat16), b

    w1, b1 = linear(ks[0], ks[1], state_dim, hidden)       # (H, S), (H, 1)
    w2, b2 = linear(ks[2], ks[3], hidden, hidden)           # (H, H), (H, 1)
    w3, b3r = linear(ks[4], ks[5], hidden, 1)                # (1, H), (1, 1)
    b3 = b3r.reshape(1)
    return w1, b1, w2, b2, w3, b3


def reference_forward(state, w1, b1, w2, b2, w3, b3):
    """Plain-JAX reference mirroring the kernel's bf16-operand / f32-accumulate math."""
    f32 = jnp.float32
    hp = jax.lax.Precision.HIGHEST
    x = state.astype(jnp.bfloat16).astype(f32)
    h1 = jnp.maximum(jnp.dot(x, w1.astype(f32).T, precision=hp) + b1[:, 0], 0.0)
    h1 = h1.astype(jnp.bfloat16).astype(f32)
    h2 = jnp.maximum(jnp.dot(h1, w2.astype(f32).T, precision=hp) + b2[:, 0], 0.0)
    h2 = h2.astype(jnp.bfloat16).astype(f32)
    return jnp.dot(h2, w3.astype(f32).T, precision=hp) + b3


if __name__ == "__main__":
    key = jax.random.PRNGKey(0)
    k_state, k_params, k_state2 = jax.random.split(key, 3)

    state_dim = 16
    params = init_params(k_params, state_dim)

    # Small primary case (single tile).
    batch = 8
    state = jax.random.normal(k_state, (batch, state_dim), dtype=jnp.float32)
    value = value_network_forward(state, *params)
    jax.block_until_ready(value)
    ref = reference_forward(state, *params)
    assert value.shape == (batch, 1)
    assert jnp.allclose(value, ref, atol=1e-2, rtol=1e-2), float(jnp.max(jnp.abs(value - ref)))

    # Second case: default block_b, exercises the >=2-step batch grid (v7x cap) + remainder
    # padding (B=600 -> 2 tiles of 384).
    batch2 = 600
    state2 = jax.random.normal(k_state2, (batch2, state_dim), dtype=jnp.float32)
    value2 = value_network_forward(state2, *params)
    jax.block_until_ready(value2)
    ref2 = reference_forward(state2, *params)
    assert value2.shape == (batch2, 1)
    assert jnp.allclose(value2, ref2, atol=1e-2, rtol=1e-2), float(jnp.max(jnp.abs(value2 - ref2)))

    # Third case: explicit small tile, 3 grid steps.
    value3 = value_network_forward(state2, *params, block_b=256)
    jax.block_until_ready(value3)
    assert jnp.allclose(value3, ref2, atol=1e-2, rtol=1e-2), float(jnp.max(jnp.abs(value3 - ref2)))

    print("KERNEL_OK")
</pallas_src>

<mosaic_0001>
module attributes {stable_mosaic.version = 11 : i64} {
  func.func @_value_kernel(%arg0: i32, %arg1: memref<16x128xbf16, #tpu.memory_space<vmem>>, %arg2: memref<256x16xbf16, #tpu.memory_space<vmem>>, %arg3: memref<256x1xf32, #tpu.memory_space<vmem>>, %arg4: memref<256x256xbf16, #tpu.memory_space<vmem>>, %arg5: memref<256x1xf32, #tpu.memory_space<vmem>>, %arg6: memref<1x256xbf16, #tpu.memory_space<vmem>>, %arg7: memref<1xf32, #tpu.memory_space<smem>>, %arg8: memref<1x128xf32, #tpu.memory_space<vmem>>) attributes {dimension_semantics = [#tpu.dimension_semantics<parallel>], iteration_bounds = array<i64: 1>, scalar_prefetch = 0 : i64, scratch_operands = 0 : i64, tpu.core_type = #tpu.core_type<tc>, window_params = [{transform_indices = @transform_0, window_bounds = array<i64: 16, 128>}, {pipeline_mode = #tpu.pipeline_mode<synchronous>, transform_indices = @transform_1, window_bounds = array<i64: 256, 16>}, {pipeline_mode = #tpu.pipeline_mode<synchronous>, transform_indices = @transform_2, window_bounds = array<i64: 256, 1>}, {pipeline_mode = #tpu.pipeline_mode<synchronous>, transform_indices = @transform_3, window_bounds = array<i64: 256, 256>}, {pipeline_mode = #tpu.pipeline_mode<synchronous>, transform_indices = @transform_4, window_bounds = array<i64: 256, 1>}, {pipeline_mode = #tpu.pipeline_mode<synchronous>, transform_indices = @transform_5, window_bounds = array<i64: 1, 256>}, {transform_indices = @transform_6, window_bounds = array<i64: 1>}, {transform_indices = @transform_7, window_bounds = array<i64: 1, 128>}]} {
    %c0 = arith.constant 0 : index
    %c0_0 = arith.constant 0 : index
    %0 = vector.load %arg1[%c0, %c0_0] : memref<16x128xbf16, #tpu.memory_space<vmem>>, vector<16x128xbf16>
    %c0_1 = arith.constant 0 : index
    %c0_2 = arith.constant 0 : index
    %1 = vector.load %arg2[%c0_1, %c0_2] : memref<256x16xbf16, #tpu.memory_space<vmem>>, vector<256x16xbf16>
    %cst = arith.constant dense<0.000000e+00> : vector<256x128xf32>
    %2 = tpu.matmul %1, %0, %cst {dimension_numbers = #tpu.dot_dimension_numbers<[1], [0], [0], [1], [0, 0, 1, 1], [], []>} : vector<256x16xbf16>, vector<16x128xbf16>, vector<256x128xf32> -> vector<256x128xf32>
    %c0_3 = arith.constant 0 : index
    %c0_4 = arith.constant 0 : index
    %3 = vector.load %arg3[%c0_3, %c0_4] : memref<256x1xf32, #tpu.memory_space<vmem>>, vector<256x1xf32>
    %4 = vector.broadcast %3 : vector<256x1xf32> to vector<256x128xf32>
    %5 = arith.addf %2, %4 : vector<256x128xf32>
    %cst_5 = arith.constant 0.000000e+00 : f32
    %6 = vector.broadcast %cst_5 : f32 to vector<256x128xf32>
    %7 = arith.maximumf %5, %6 : vector<256x128xf32>
    %8 = arith.truncf %7 : vector<256x128xf32> to vector<256x128xbf16>
    %c0_6 = arith.constant 0 : index
    %c0_7 = arith.constant 0 : index
    %9 = vector.load %arg4[%c0_6, %c0_7] : memref<256x256xbf16, #tpu.memory_space<vmem>>, vector<256x256xbf16>
    %cst_8 = arith.constant dense<0.000000e+00> : vector<256x128xf32>
    %10 = tpu.matmul %9, %8, %cst_8 {dimension_numbers = #tpu.dot_dimension_numbers<[1], [0], [0], [1], [0, 0, 1, 1], [], []>} : vector<256x256xbf16>, vector<256x128xbf16>, vector<256x128xf32> -> vector<256x128xf32>
    %c0_9 = arith.constant 0 : index
    %c0_10 = arith.constant 0 : index
    %11 = vector.load %arg5[%c0_9, %c0_10] : memref<256x1xf32, #tpu.memory_space<vmem>>, vector<256x1xf32>
    %12 = vector.broadcast %11 : vector<256x1xf32> to vector<256x128xf32>
    %13 = arith.addf %10, %12 : vector<256x128xf32>
    %cst_11 = arith.constant 0.000000e+00 : f32
    %14 = vector.broadcast %cst_11 : f32 to vector<256x128xf32>
    %15 = arith.maximumf %13, %14 : vector<256x128xf32>
    %16 = arith.truncf %15 : vector<256x128xf32> to vector<256x128xbf16>
    %c0_12 = arith.constant 0 : index
    %c0_13 = arith.constant 0 : index
    %17 = vector.load %arg6[%c0_12, %c0_13] : memref<1x256xbf16, #tpu.memory_space<vmem>>, vector<1x256xbf16>
    %cst_14 = arith.constant dense<0.000000e+00> : vector<1x128xf32>
    %18 = tpu.matmul %17, %16, %cst_14 {dimension_numbers = #tpu.dot_dimension_numbers<[1], [0], [0], [1], [0, 0, 1, 1], [], []>} : vector<1x256xbf16>, vector<256x128xbf16>, vector<1x128xf32> -> vector<1x128xf32>
    %c0_15 = arith.constant 0 : index
    %19 = memref.load %arg7[%c0_15] : memref<1xf32, #tpu.memory_space<smem>>
    %20 = vector.broadcast %19 : f32 to vector<1x128xf32>
    %21 = arith.addf %18, %20 : vector<1x128xf32>
    %c0_16 = arith.constant 0 : index
    %c0_17 = arith.constant 0 : index
    %22 = vector.load %arg8[%c0_16, %c0_17] : memref<1x128xf32, #tpu.memory_space<vmem>>, vector<1x128xf32>
    tpu.vector_store %arg8[%c0_16, %c0_17], %21 {strides = array<i32>} : memref<1x128xf32, #tpu.memory_space<vmem>>, vector<1x128xf32>,
    return
  }
  func.func @transform_0(%arg0: i32) -> (i32, i32) {
    %c0_i32 = arith.constant 0 : i32
    %c0_i32_0 = arith.constant 0 : i32
    return %c0_i32, %arg0 : i32, i32
  }
  func.func @transform_1(%arg0: i32) -> (i32, i32) {
    %c0_i32 = arith.constant 0 : i32
    %c0_i32_0 = arith.constant 0 : i32
    %c0_i32_1 = arith.constant 0 : i32
    return %c0_i32, %c0_i32_0 : i32, i32
  }
  func.func @transform_2(%arg0: i32) -> (i32, i32) {
    %c0_i32 = arith.constant 0 : i32
    %c0_i32_0 = arith.constant 0 : i32
    %c0_i32_1 = arith.constant 0 : i32
    return %c0_i32, %c0_i32_0 : i32, i32
  }
  func.func @transform_3(%arg0: i32) -> (i32, i32) {
    %c0_i32 = arith.constant 0 : i32
    %c0_i32_0 = arith.constant 0 : i32
    %c0_i32_1 = arith.constant 0 : i32
    return %c0_i32, %c0_i32_0 : i32, i32
  }
  func.func @transform_4(%arg0: i32) -> (i32, i32) {
    %c0_i32 = arith.constant 0 : i32
    %c0_i32_0 = arith.constant 0 : i32
    %c0_i32_1 = arith.constant 0 : i32
    return %c0_i32, %c0_i32_0 : i32, i32
  }
  func.func @transform_5(%arg0: i32) -> (i32, i32) {
    %c0_i32 = arith.constant 0 : i32
    %c0_i32_0 = arith.constant 0 : i32
    %c0_i32_1 = arith.constant 0 : i32
    return %c0_i32, %c0_i32_0 : i32, i32
  }
  func.func @transform_6(%arg0: i32) -> i32 {
    %c0_i32 = arith.constant 0 : i32
    %c0_i32_0 = arith.constant 0 : i32
    return %c0_i32 : i32
  }
  func.func @transform_7(%arg0: i32) -> (i32, i32) {
    %c0_i32 = arith.constant 0 : i32
    %c0_i32_0 = arith.constant 0 : i32
    return %c0_i32, %arg0 : i32, i32
  }
}

</mosaic_0001>

<bundles_post_ra>
// kernel: value_network_forward.1
= control target key start
LH: loop header
LB: loop body
LE: loop exit
PB: predicated region body
PF: predicated region fallthrough
CT: control target
= control target key end

     0   :  { %v1600_v0 = vmov 0   ;;  %vm340_vm0 = vcmask 130048   ;;  %s2188_s2 = inlined_call_operand.vmem [shape: f32[256,1], index: 2, kind: input, shape index: {}]   ;;  %s2189_s0 = inlined_call_operand.vmem [shape: bf16[16,128], index: 0, kind: input, shape index: {}]   ;;  %s2190_s1 = inlined_call_operand.vmem [shape: bf16[256,16], index: 1, kind: input, shape index: {}]   ;;  %s2191_s4 = inlined_call_operand.vmem [shape: f32[256,1], index: 4, kind: input, shape index: {}]   ;;  %s2192_s3 = inlined_call_operand.vmem [shape: bf16[256,256], index: 3, kind: input, shape index: {}]   ;;  %s2193_s5 = inlined_call_operand.vmem [shape: bf16[1,256], index: 5, kind: input, shape index: {}]   ;;  %s2194_s6 = inlined_call_operand.<no memory space> [shape: f32[1], index: 6, kind: input, shape index: {}]   ;;  %s2195_s7 = inlined_call_operand.vmem [shape: f32[1,128], index: 7, kind: output, shape index: {}]  }
   0x1   :  { %1534 = vset.pattern.permute.xlu1 %v1600_v0  ;;  %1533 = vset.pattern.permute.xlu0 %v1600_v0  ;;  %v78_v1 = vld [vmem:[%s2188_s2 + $0x80] sm:$0xff]  ;;  %v79_v4 = vld [vmem:[%s2188_s2 + $0x88] sm:$0xff]  ;;  %v80_v8 = vld [vmem:[%s2188_s2 + $0x90] sm:$0xff] }
   0x2   :  { %v62_v2 = vld [vmem:[%s2188_s2] sm:$0xff]  ;;  %176 = vperm.xlu0 %1533, %v78_v1   ;;  %v63_v5 = vld [vmem:[%s2188_s2 + $0x8] sm:$0xff]  ;;  %v81_v9 = vld [vmem:[%s2188_s2 + $0x98] sm:$0xff] }
   0x3   :  { %96 = vperm.xlu1 %1534, %v62_v2   ;;  %v1535_v3 = vld [vmem:[%s2189_s0] sm:$0xff]   ;;  %v1537_v7 = vld [vmem:[%s2190_s1 + $0x8] sm:$0xff]   ;;  %v1538_v10 = vld [vmem:[%s2190_s1 + $0x10] sm:$0xff]  }
   0x4   :  { %1481 = vmatprep.subr.bf16.mxu0 %v1535_v3  ;;  %v1536_v6 = vld [vmem:[%s2190_s1] sm:$0xff]   ;;  %v64_v11 = vld [vmem:[%s2188_s2 + $0x10] sm:$0xff]  ;;  %v65_v12 = vld [vmem:[%s2188_s2 + $0x18] sm:$0xff] }
   0x5   :  { %1482 = vmatpush3.bf16.msra.mxu0 %v1535_v3  ;;  %1483 = vmatprep.mubr.msk.bf16.mxu0 %vm340_vm0, %v1536_v6  ;;  %v1539_v13 = vld [vmem:[%s2190_s1 + $0x18] sm:$0xff]   ;;  %v1540_v14 = vld [vmem:[%s2190_s1 + $0x20] sm:$0xff]   ;;  %v83_v16 = vld [vmem:[%s2188_s2 + $0xa8] sm:$0xff] }
   0x6   :  { %181 = vperm.xlu0 %1533, %v79_v4   ;;  %v82_v15 = vld [vmem:[%s2188_s2 + $0xa0] sm:$0xff]  ;;  %v67_v18 = vld [vmem:[%s2188_s2 + $0x28] sm:$0xff]  ;;  %v1542_v20 = vld [vmem:[%s2190_s1 + $0x30] sm:$0xff]  }
   0x7   :  { %101 = vperm.xlu1 %1534, %v63_v5   ;;  %v66_v17 = vld [vmem:[%s2188_s2 + $0x20] sm:$0xff]  ;;  %v1541_v19 = vld [vmem:[%s2190_s1 + $0x28] sm:$0xff]   ;;  %v84_v21 = vld [vmem:[%s2188_s2 + $0xb0] sm:$0xff] }
   0x8   :  { %1484 = vmatmul.mubr.msk.bf16.vlgmr.msra.gmra.mrb[0].mxu0 %vm340_vm0, %v1537_v7  ;;  %v85_v22 = vld [vmem:[%s2188_s2 + $0xb8] sm:$0xff]  ;;  %v68_v23 = vld [vmem:[%s2188_s2 + $0x30] sm:$0xff]  ;;  %v1544_v26 = vld [vmem:[%s2190_s1 + $0x40] sm:$0xff]  }
   0x9   :  { %1487 = vmatprep.mubr.msk.bf16.mxu0 %vm340_vm0, %v1538_v10  ;;  %v69_v24 = vld [vmem:[%s2188_s2 + $0x38] sm:$0xff]  ;;  %v86_v27 = vld [vmem:[%s2188_s2 + $0xc0] sm:$0xff]  ;;  %v87_v28 = vld [vmem:[%s2188_s2 + $0xc8] sm:$0xff] }
   0xa   :  { %186 = vperm.xlu0 %1533, %v80_v8   ;;  %v1543_v25 = vld [vmem:[%s2190_s1 + $0x38] sm:$0xff]   ;;  %v70_v29 = vld [vmem:[%s2188_s2 + $0x40] sm:$0xff]  ;;  %v71_v30 = vld [vmem:[%s2188_s2 + $0x48] sm:$0xff] }
   0xb   :  { %191 = vperm.xlu1 %1534, %v81_v9   ;;  %v1545_v31 = vld [vmem:[%s2190_s1 + $0x48] sm:$0xff]   ;;  %v1546_v32 = vld [vmem:[%s2190_s1 + $0x50] sm:$0xff]   ;;  %v89_v34 = vld [vmem:[%s2188_s2 + $0xd8] sm:$0xff] }
   0xc   :  { %v88_v33 = vld [vmem:[%s2188_s2 + $0xd0] sm:$0xff]  ;;  %v73_v36 = vld [vmem:[%s2188_s2 + $0x58] sm:$0xff]  ;;  %v1548_v38 = vld [vmem:[%s2190_s1 + $0x60] sm:$0xff]  }
   0xd   :  { %v72_v35 = vld [vmem:[%s2188_s2 + $0x50] sm:$0xff]  ;;  %v1547_v37 = vld [vmem:[%s2190_s1 + $0x58] sm:$0xff]   ;;  %v90_v39 = vld [vmem:[%s2188_s2 + $0xe0] sm:$0xff] }
   0xe   :  { %106 = vperm.xlu0 %1533, %v64_v11   ;;  %v91_v40 = vld [vmem:[%s2188_s2 + $0xe8] sm:$0xff]  ;;  %v74_v41 = vld [vmem:[%s2188_s2 + $0x60] sm:$0xff]  ;;  %v1550_v44 = vld [vmem:[%s2190_s1 + $0x70] sm:$0xff]  }
   0xf   :  { %111 = vperm.xlu1 %1534, %v65_v12   ;;  %v75_v42 = vld [vmem:[%s2188_s2 + $0x68] sm:$0xff]  ;;  %v92_v45 = vld [vmem:[%s2188_s2 + $0xf0] sm:$0xff]  ;;  %v93_v46 = vld [vmem:[%s2188_s2 + $0xf8] sm:$0xff] }
  0x10   :  { %1488 = vmatmul.mubr.msk.bf16.gmra.mrb[4].mxu0 %vm340_vm0, %v1539_v13  ;;  %v1549_v43 = vld [vmem:[%s2190_s1 + $0x68] sm:$0xff]   ;;  %v76_v47 = vld [vmem:[%s2188_s2 + $0x70] sm:$0xff]  ;;  %v77_v48 = vld [vmem:[%s2188_s2 + $0x78] sm:$0xff] }
  0x11   :  { %1491 = vmatprep.mubr.msk.bf16.mxu0 %vm340_vm0, %v1540_v14  ;;  %v1551_v49 = vld [vmem:[%s2190_s1 + $0x78] sm:$0xff]   ;;  %v646_v50 = vld [vmem:[%s2191_s4 + $0x80] sm:$0xff]  ;;  %v647_v51 = vld [vmem:[%s2191_s4 + $0x88] sm:$0xff] }
  0x12   :  { %196 = vperm.xlu0 %1533, %v82_v15   ;;  %v630_v52 = vld [vmem:[%s2191_s4] sm:$0xff]  ;;  %v631_v53 = vld [vmem:[%s2191_s4 + $0x8] sm:$0xff]  ;;  %v648_v54 = vld [vmem:[%s2191_s4 + $0x90] sm:$0xff] }
  0x13   :  { %201 = vperm.xlu1 %1534, %v83_v16   ;;  %v649_v55 = vld [vmem:[%s2191_s4 + $0x98] sm:$0xff]  ;;  %v632_v56 = vld [vmem:[%s2191_s4 + $0x10] sm:$0xff]  ;;  %v650_v58 = vld [vmem:[%s2191_s4 + $0xa0] sm:$0xff] }
  0x14   :  { %v633_v57 = vld [vmem:[%s2191_s4 + $0x18] sm:$0xff]  ;;  %v651_v59 = vld [vmem:[%s2191_s4 + $0xa8] sm:$0xff]  ;;  %v634_v60 = vld [vmem:[%s2191_s4 + $0x20] sm:$0xff] }
  0x15   :  { %v635_v61 = vld [vmem:[%s2191_s4 + $0x28] sm:$0xff]  ;;  %v652_v62 = vld [vmem:[%s2191_s4 + $0xb0] sm:$0xff]  ;;  %v653_v63 = vld [vmem:[%s2191_s4 + $0xb8] sm:$0xff] }
  0x16   :  { %116 = vperm.xlu0 %1533, %v66_v17   ;;  %v636_v0 = vld [vmem:[%s2191_s4 + $0x30] sm:$0xff]  ;;  %v637_v1 = vld [vmem:[%s2191_s4 + $0x38] sm:$0xff]  ;;  %v654_v2 = vld [vmem:[%s2191_s4 + $0xc0] sm:$0xff] }
  0x17   :  { %121 = vperm.xlu1 %1534, %v67_v18   ;;  %v655_v3 = vld [vmem:[%s2191_s4 + $0xc8] sm:$0xff]  ;;  %v638_v4 = vld [vmem:[%s2191_s4 + $0x40] sm:$0xff]  ;;  %v656_v6 = vld [vmem:[%s2191_s4 + $0xd0] sm:$0xff] }
  0x18   :  { %1492 = vmatmul.mubr.msk.bf16.gmra.mrb[8].mxu0 %vm340_vm0, %v1541_v19  ;;  %v639_v5 = vld [vmem:[%s2191_s4 + $0x48] sm:$0xff]  ;;  %v657_v7 = vld [vmem:[%s2191_s4 + $0xd8] sm:$0xff]  ;;  %v640_v8 = vld [vmem:[%s2191_s4 + $0x50] sm:$0xff] }
  0x19   :  { %1495 = vmatprep.mubr.msk.bf16.mxu0 %vm340_vm0, %v1542_v20  ;;  %v641_v9 = vld [vmem:[%s2191_s4 + $0x58] sm:$0xff]  ;;  %v658_v10 = vld [vmem:[%s2191_s4 + $0xe0] sm:$0xff]  ;;  %v659_v11 = vld [vmem:[%s2191_s4 + $0xe8] sm:$0xff] }
  0x1a   :  { %206 = vperm.xlu0 %1533, %v84_v21   ;;  %v642_v12 = vld [vmem:[%s2191_s4 + $0x60] sm:$0xff]  ;;  %v643_v13 = vld [vmem:[%s2191_s4 + $0x68] sm:$0xff]  ;;  %v660_v14 = vld [vmem:[%s2191_s4 + $0xf0] sm:$0xff] }
  0x1b   :  { %211 = vperm.xlu1 %1534, %v85_v22   ;;  %v661_v15 = vld [vmem:[%s2191_s4 + $0xf8] sm:$0xff]  ;;  %v644_v16 = vld [vmem:[%s2191_s4 + $0x70] sm:$0xff]  ;;  %v1554_v22 = vld [vmem:[%s2192_s3 + $0x4] ss:$8 sps:$4 sm:$0xff]  }
  0x1c   :  { %v645_v17 = vld [vmem:[%s2191_s4 + $0x78] sm:$0xff] }
  0x1e   :  { %126 = vperm.xlu0 %1533, %v68_v23   ;;  %v1557_v23 = vld [vmem:[%s2192_s3 + $0x54] ss:$8 sps:$4 sm:$0xff]  }
  0x1f   :  { %131 = vperm.xlu1 %1534, %v69_v24   ;;  %1054 = vmatprep.mubr.bf16.mxu1 %v1557_v23 }
  0x20   :  { %1496 = vmatmul.mubr.msk.bf16.gmra.mrb[12].mxu0 %vm340_vm0, %v1543_v25 }
  0x21   :  { %1499 = vmatprep.mubr.msk.bf16.mxu0 %vm340_vm0, %v1544_v26 }
  0x22   :  { %216 = vperm.xlu0 %1533, %v86_v27  }
  0x23   :  { %221 = vperm.xlu1 %1534, %v87_v28  }
  0x26   :  { %136 = vperm.xlu0 %1533, %v70_v29  }
  0x27   :  { %141 = vperm.xlu1 %1534, %v71_v30  }
  0x28   :  { %1500 = vmatmul.mubr.msk.bf16.gmra.mrb[16].mxu0 %vm340_vm0, %v1545_v31 }
  0x29   :  { %1503 = vmatprep.mubr.msk.bf16.mxu0 %vm340_vm0, %v1546_v32 }
  0x2a   :  { %226 = vperm.xlu0 %1533, %v88_v33  }
  0x2b   :  { %231 = vperm.xlu1 %1534, %v89_v34  }
  0x2e   :  { %146 = vperm.xlu0 %1533, %v72_v35  }
  0x2f   :  { %151 = vperm.xlu1 %1534, %v73_v36  }
  0x30   :  { %1504 = vmatmul.mubr.msk.bf16.gmra.mrb[20].mxu0 %vm340_vm0, %v1547_v37 }
  0x31   :  { %1507 = vmatprep.mubr.msk.bf16.mxu0 %vm340_vm0, %v1548_v38 }
  0x32   :  { %236 = vperm.xlu0 %1533, %v90_v39  }
  0x33   :  { %241 = vperm.xlu1 %1534, %v91_v40  }
  0x36   :  { %156 = vperm.xlu0 %1533, %v74_v41  }
  0x37   :  { %161 = vperm.xlu1 %1534, %v75_v42  }
  0x38   :  { %1508 = vmatmul.mubr.msk.bf16.gmra.mrb[24].mxu0 %vm340_vm0, %v1549_v43 }
  0x39   :  { %1511 = vmatprep.mubr.msk.bf16.mxu0 %vm340_vm0, %v1550_v44 }
  0x3a   :  { %246 = vperm.xlu0 %1533, %v92_v45  }
  0x3b   :  { %251 = vperm.xlu1 %1534, %v93_v46  }
  0x3e   :  { %166 = vperm.xlu0 %1533, %v76_v47  }
  0x3f   :  { %171 = vperm.xlu1 %1534, %v77_v48  }
  0x40   :  { %1512 = vmatmul.mubr.msk.bf16.gmra.mrb[28].mxu0 %vm340_vm0, %v1551_v49 }
  0x41   :  { %1014 = vmatprep.mubr.bf16.mxu0 %v1554_v22 }
  0x42   :  { %744 = vperm.xlu0 %1533, %v646_v50  }
  0x43   :  { %749 = vperm.xlu1 %1534, %v647_v51  }
  0x46   :  { %664 = vperm.xlu0 %1533, %v630_v52  }
  0x47   :  { %669 = vperm.xlu1 %1534, %v631_v53  }
  0x4a   :  { %754 = vperm.xlu0 %1533, %v648_v54  }
  0x4b   :  { %759 = vperm.xlu1 %1534, %v649_v55  }
  0x4e   :  { %674 = vperm.xlu0 %1533, %v632_v56  }
  0x4f   :  { %679 = vperm.xlu1 %1534, %v633_v57  }
  0x52   :  { %764 = vperm.xlu0 %1533, %v650_v58  }
  0x53   :  { %769 = vperm.xlu1 %1534, %v651_v59  }
  0x56   :  { %684 = vperm.xlu0 %1533, %v634_v60  }
  0x57   :  { %689 = vperm.xlu1 %1534, %v635_v61  }
  0x5a   :  { %774 = vperm.xlu0 %1533, %v652_v62  }
  0x5b   :  { %779 = vperm.xlu1 %1534, %v653_v63  }
  0x5e   :  { %694 = vperm.xlu0 %1533, %v636_v0  }
  0x5f   :  { %699 = vperm.xlu1 %1534, %v637_v1  }
  0x62   :  { %784 = vperm.xlu0 %1533, %v654_v2  }
  0x63   :  { %789 = vperm.xlu1 %1534, %v655_v3  }
  0x66   :  { %704 = vperm.xlu0 %1533, %v638_v4  }
  0x67   :  { %709 = vperm.xlu1 %1534, %v639_v5  }
  0x6a   :  { %794 = vperm.xlu0 %1533, %v656_v6  }
  0x6b   :  { %799 = vperm.xlu1 %1534, %v657_v7  }
  0x6e   :  { %714 = vperm.xlu0 %1533, %v640_v8  }
  0x6f   :  { %719 = vperm.xlu1 %1534, %v641_v9  }
  0x72   :  { %804 = vperm.xlu0 %1533, %v658_v10  }
  0x73   :  { %809 = vperm.xlu1 %1534, %v659_v11  }
  0x76   :  { %724 = vperm.xlu0 %1533, %v642_v12  }
  0x77   :  { %729 = vperm.xlu1 %1534, %v643_v13  }
  0x7a   :  { %814 = vperm.xlu0 %1533, %v660_v14  }
  0x7b   :  { %819 = vperm.xlu1 %1534, %v661_v15  }
  0x7e   :  { %734 = vperm.xlu0 %1533, %v644_v16  }
  0x7f   :  { %739 = vperm.xlu1 %1534, %v645_v17  }
  0x81   :  { %v1901_v18 = vpop.permute.xlu0 %176 }
  0x82   :  { %v97_v19 = vpop.permute.xlu1 %96 }
  0x85   :  { %v1903_v20 = vpop.permute.xlu0 %181 }
  0x86   :  { %v102_v21 = vpop.permute.xlu1 %101 }
  0x89   :  { %v1911_v24 = vpop.permute.xlu0 %186 }
  0x8a   :  { %v1913_v25 = vpop.permute.xlu1 %191 }
  0x8d   :  { %v107_v26 = vpop.permute.xlu0 %106 }
  0x8e   :  { %v112_v27 = vpop.permute.xlu1 %111 }
  0x91   :  { %v1915_v28 = vpop.permute.xlu0 %196 }
  0x92   :  { %v1917_v29 = vpop.permute.xlu1 %201 }
  0x95   :  { %v117_v30 = vpop.permute.xlu0 %116 }
  0x96   :  { %v122_v31 = vpop.permute.xlu1 %121 }
  0x99   :  { %v1919_v32 = vpop.permute.xlu0 %206 }
  0x9a   :  { %v1921_v33 = vpop.permute.xlu1 %211 }
  0x9d   :  { %v127_v34 = vpop.permute.xlu0 %126 }
  0x9e   :  { %v132_v35 = vpop.permute.xlu1 %131 }
  0xa1   :  { %v1923_v36 = vpop.permute.xlu0 %216 }
  0xa2   :  { %v1925_v37 = vpop.permute.xlu1 %221 }
  0xa5   :  { %v137_v38 = vpop.permute.xlu0 %136 }
  0xa6   :  { %v142_v39 = vpop.permute.xlu1 %141 }
  0xa9   :  { %v1927_v40 = vpop.permute.xlu0 %226 }
  0xaa   :  { %v1929_v41 = vpop.permute.xlu1 %231 }
  0xad   :  { %v147_v43 = vpop.permute.xlu0 %146 }
  0xae   :  { %v152_v46 = vpop.permute.xlu1 %151 }
  0xb1   :  { %v1931_v54 = vpop.permute.xlu0 %236 }
  0xb2   :  { %v1935_v59 = vpop.permute.xlu1 %241 }
  0xb5   :  { %v157_v3 = vpop.permute.xlu0 %156 }
  0xb6   :  { %v162_v7 = vpop.permute.xlu1 %161 }
  0xb9   :  { %v1943_v15 = vpop.permute.xlu0 %246 }
  0xba   :  { %v1945_v22 = vpop.permute.xlu1 %251 }
  0xdb   :  { %v1485_v42 = vpop.f32.mrb[0].mxu0 }
  0xdc   :  { %v423_v44 = vpop.f32.mrb[1].mxu0  ;;  %v432_v45 = vadd.f32 %v1485_v42, %v107_v26  ;;  %v167_v42 = vpop.permute.xlu0 %166 }
  0xdd   :  { %v424_v47 = vadd.f32 %v423_v44, %v97_v19  ;;  %v1486_v48 = vpop.f32.mrb[2].mxu0 }
  0xde   :  { %v435_v49 = vadd.f32 %v1486_v48, %v112_v27  ;;  %v426_v50 = vpop.f32.mrb[3].mxu0  ;;  %v552_v52 = vmax.f32 %v432_v45, 0.0 }
  0xdf   :  { %v427_v51 = vadd.f32 %v426_v50, %v102_v21  ;;  %v550_v55 = vmax.f32 %v424_v47, 0.0  ;;  %v172_v47 = vpop.permute.xlu1 %171 }
  0xe0   :  { %v553_v53 = vmax.f32 %v435_v49, 0.0 }
  0xe1   :  { %v551_v56 = vmax.f32 %v427_v51, 0.0 }
  0xe2   :  { %v1933_v57 = vpack.c.bf16 %v553_v53, %v552_v52 }
  0xe3   :  { %v1489_v58 = vpop.f32.mrb[4].mxu0  ;;  %v1937_v60 = vpack.c.bf16 %v551_v56, %v550_v55 }
  0xe4   :  { %v439_v61 = vpop.f32.mrb[5].mxu0  ;;  %v448_v62 = vadd.f32 %v1489_v58, %v127_v34 }
  0xe5   :  { %v440_v63 = vadd.f32 %v439_v61, %v117_v30  ;;  %v1490_v0 = vpop.f32.mrb[6].mxu0 }
  0xe6   :  { %v451_v1 = vadd.f32 %v1490_v0, %v132_v35  ;;  %v442_v2 = vpop.f32.mrb[7].mxu0  ;;  %v556_v5 = vmax.f32 %v448_v62, 0.0 }
  0xe7   :  { %v443_v4 = vadd.f32 %v442_v2, %v122_v31  ;;  %v554_v8 = vmax.f32 %v440_v63, 0.0 }
  0xe8   :  { %v557_v6 = vmax.f32 %v451_v1, 0.0 }
  0xe9   :  { %v555_v9 = vmax.f32 %v443_v4, 0.0 }
  0xea   :  { %v1939_v10 = vpack.c.bf16 %v557_v6, %v556_v5 }
  0xeb   :  { %v1493_v11 = vpop.f32.mrb[8].mxu0  ;;  %v1941_v12 = vpack.c.bf16 %v555_v9, %v554_v8 }
  0xec   :  { %v455_v13 = vpop.f32.mrb[9].mxu0  ;;  %v464_v14 = vadd.f32 %v1493_v11, %v147_v43 }
  0xed   :  { %v456_v16 = vadd.f32 %v455_v13, %v137_v38  ;;  %v1494_v17 = vpop.f32.mrb[10].mxu0 }
  0xee   :  { %v467_v19 = vadd.f32 %v1494_v17, %v152_v46  ;;  %v458_v21 = vpop.f32.mrb[11].mxu0  ;;  %v560_v26 = vmax.f32 %v464_v14, 0.0 }
  0xef   :  { %v459_v23 = vadd.f32 %v458_v21, %v142_v39  ;;  %v558_v30 = vmax.f32 %v456_v16, 0.0 }
  0xf0   :  { %v561_v27 = vmax.f32 %v467_v19, 0.0 }
  0xf1   :  { %v559_v31 = vmax.f32 %v459_v23, 0.0 }
  0xf2   :  { %v1947_v34 = vpack.c.bf16 %v561_v27, %v560_v26 }
  0xf3   :  { %v1497_v35 = vpop.f32.mrb[12].mxu0  ;;  %v1949_v44 = vpack.c.bf16 %v559_v31, %v558_v30 }
  0xf4   :  { %v471_v43 = vpop.f32.mrb[13].mxu0  ;;  %v480_v45 = vadd.f32 %v1497_v35, %v167_v42 }
  0xf5   :  { %v472_v38 = vadd.f32 %v471_v43, %v157_v3  ;;  %v1498_v48 = vpop.f32.mrb[14].mxu0 }
  0xf6   :  { %v483_v46 = vadd.f32 %v1498_v48, %v172_v47  ;;  %v474_v49 = vpop.f32.mrb[15].mxu0  ;;  %v564_v51 = vmax.f32 %v480_v45, 0.0 }
  0xf7   :  { %v475_v50 = vadd.f32 %v474_v49, %v162_v7  ;;  %v562_v52 = vmax.f32 %v472_v38, 0.0 }
  0xf8   :  { %v565_v39 = vmax.f32 %v483_v46, 0.0 }
  0xf9   :  { %v563_v53 = vmax.f32 %v475_v50, 0.0 }
  0xfa   :  { %v1951_v55 = vpack.c.bf16 %v565_v39, %v564_v51 }
  0xfb   :  { %v1501_v56 = vpop.f32.mrb[16].mxu0  ;;  %v1953_v58 = vpack.c.bf16 %v563_v53, %v562_v52  ;;  %v1562_v52 = vld [vmem:[%s2192_s3 + $0x10] ss:$8 sps:$4 sm:$0xff]   ;;  %v1563_v53 = vld [vmem:[%s2192_s3 + $0x60] ss:$8 sps:$4 sm:$0xff]  }
  0xfc   :  { %v487_v61 = vpop.f32.mrb[17].mxu0  ;;  %v496_v62 = vadd.f32 %v1501_v56, %v1911_v24  ;;  %v1566_v56 = vld [vmem:[%s2192_s3 + $0x74] ss:$8 sps:$4 sm:$0xff]  }
  0xfd   :  { %v488_v63 = vadd.f32 %v487_v61, %v1901_v18  ;;  %v1502_v0 = vpop.f32.mrb[18].mxu0  ;;  %v1569_v61 = vld [vmem:[%s2192_s3 + $0x70] ss:$8 sps:$4 sm:$0xff]  }
  0xfe   :  { %v499_v1 = vadd.f32 %v1502_v0, %v1913_v25  ;;  %v490_v2 = vpop.f32.mrb[19].mxu0  ;;  %v568_v4 = vmax.f32 %v496_v62, 0.0  ;;  %v1570_v62 = vld [vmem:[%s2192_s3 + $0x34] ss:$8 sps:$4 sm:$0xff]   ;;  %v1574_v0 = vld [vmem:[%s2192_s3 + $0x30] ss:$8 sps:$4 sm:$0xff]  }
  0xff   :  { %v491_v3 = vadd.f32 %v490_v2, %v1903_v20  ;;  %v566_v6 = vmax.f32 %v488_v63, 0.0  ;;  %v1572_v63 = vld [vmem:[%s2192_s3 + $0x84] ss:$8 sps:$4 sm:$0xff]  }
 0x100   :  { %v569_v5 = vmax.f32 %v499_v1, 0.0  ;;  %v1575_v1 = vld [vmem:[%s2192_s3 + $0x80] ss:$8 sps:$4 sm:$0xff]   ;;  %v1576_v2 = vld [vmem:[%s2192_s3 + $0x44] ss:$8 sps:$4 sm:$0xff]  }
 0x101   :  { %v567_v7 = vmax.f32 %v491_v3, 0.0  ;;  %v1578_v3 = vld [vmem:[%s2192_s3 + $0x94] ss:$8 sps:$4 sm:$0xff]  }
 0x102   :  { %v591_v8 = vpack.c.bf16 %v569_v5, %v568_v4  ;;  %v1580_v4 = vld [vmem:[%s2192_s3 + $0x40] ss:$8 sps:$4 sm:$0xff]   ;;  %v1581_v5 = vld [vmem:[%s2192_s3 + $0x90] ss:$8 sps:$4 sm:$0xff]  }
 0x103   :  { %v1505_v9 = vpop.f32.mrb[20].mxu0  ;;  %v590_v11 = vpack.c.bf16 %v567_v7, %v566_v6  ;;  %v1582_v6 = vld [vmem:[%s2192_s3 + $0xa4] ss:$8 sps:$4 sm:$0xff]   ;;  %v1584_v7 = vld [vmem:[%s2192_s3 + $0xa0] ss:$8 sps:$4 sm:$0xff]  }
 0x104   :  { %v512_v13 = vadd.f32 %v1505_v9, %v1919_v32  ;;  %v503_v14 = vpop.f32.mrb[21].mxu0  ;;  %v1587_v9 = vld [vmem:[%s2192_s3 + $0xb0] ss:$8 sps:$4 sm:$0xff]  }
 0x105   :  { %v504_v24 = vadd.f32 %v503_v14, %v1915_v28  ;;  %v1506_v16 = vpop.f32.mrb[22].mxu0  ;;  %1347 = vmatprep.subr.bf16.mxu0 %v590_v11  ;;  %1515 = vmatprep.subr.bf16.mxu1 %v590_v11  ;;  %v1588_v11 = vld [vmem:[%s2192_s3 + $0xc4] ss:$8 sps:$4 sm:$0xff]   ;;  %v1591_v14 = vld [vmem:[%s2192_s3 + $0xd4] ss:$8 sps:$4 sm:$0xff]  }
 0x106   :  { %v515_v18 = vadd.f32 %v1506_v16, %v1921_v33  ;;  %v506_v25 = vpop.f32.mrb[23].mxu0  ;;  %1348 = vmatpush3.bf16.msra.mxu0 %v1937_v60  ;;  %1523 = vmatpush3.bf16.msra.mxu1 %v1937_v60  ;;  %v572_v17 = vmax.f32 %v512_v13, 0.0  ;;  %v1590_v13 = vld [vmem:[%s2192_s3 + $0xc0] ss:$8 sps:$4 sm:$0xff]   ;;  %v1594_v16 = vld [vmem:[%s2192_s3 + $0xe4] ss:$8 sps:$4 sm:$0xff]  }
 0x107   :  { %v507_v20 = vadd.f32 %v506_v25, %v1917_v29  ;;  %1349 = vmatprep.subr.bf16.mxu0 %v591_v8  ;;  %1516 = vmatprep.subr.bf16.mxu1 %v591_v8  ;;  %v570_v32 = vmax.f32 %v504_v24, 0.0  ;;  %v1585_v8 = vld [vmem:[%s2192_s3 + $0xb4] ss:$8 sps:$4 sm:$0xff]   ;;  %v1593_v24 = vld [vmem:[%s2192_s3 + $0xd0] ss:$8 sps:$4 sm:$0xff]  }
 0x108   :  { %v573_v19 = vmax.f32 %v515_v18, 0.0  ;;  %v1596_v18 = vld [vmem:[%s2192_s3 + $0xe0] ss:$8 sps:$4 sm:$0xff]   ;;  %v1597_v25 = vld [vmem:[%s2192_s3 + $0xf4] ss:$8 sps:$4 sm:$0xff]  }
 0x109   :  { %v571_v21 = vmax.f32 %v507_v20, 0.0  ;;  %v1599_v20 = vld [vmem:[%s2192_s3 + $0xf0] ss:$8 sps:$4 sm:$0xff]  }
 0x10a   :  { %v593_v23 = vpack.c.bf16 %v573_v19, %v572_v17  ;;  %1350 = vmatpush3.bf16.msra.mxu0 %v1933_v57  ;;  %1524 = vmatpush3.bf16.msra.mxu1 %v1933_v57  ;;  %v2077_v17 = vpop.permute.xlu0 %744  ;;  %v2079_v19 = vpop.permute.xlu1 %749 }
 0x10b   :  { %v592_v28 = vpack.c.bf16 %v571_v21, %v570_v32  ;;  %v1509_v33 = vpop.f32.mrb[24].mxu0 }
 0x10c   :  { %v528_v26 = vadd.f32 %v1509_v33, %v1927_v40  ;;  %v519_v29 = vpop.f32.mrb[25].mxu0 }
 0x10d   :  { %v520_v27 = vadd.f32 %v519_v29, %v1923_v36  ;;  %v1510_v30 = vpop.f32.mrb[26].mxu0  ;;  %1351 = vmatprep.subr.bf16.mxu0 %v592_v28  ;;  %1517 = vmatprep.subr.bf16.mxu1 %v592_v28 }
 0x10e   :  { %v531_v60 = vadd.f32 %v1510_v30, %v1929_v41  ;;  %v522_v31 = vpop.f32.mrb[27].mxu0  ;;  %1352 = vmatpush3.bf16.msra.mxu0 %v1941_v12  ;;  %1525 = vmatpush3.bf16.msra.mxu1 %v1941_v12  ;;  %v576_v42 = vmax.f32 %v528_v26, 0.0  ;;  %v665_v32 = vpop.permute.xlu0 %664 }
 0x10f   :  { %v523_v35 = vadd.f32 %v522_v31, %v1925_v37  ;;  %1353 = vmatprep.subr.bf16.mxu0 %v593_v23  ;;  %1518 = vmatprep.subr.bf16.mxu1 %v593_v23  ;;  %v574_v40 = vmax.f32 %v520_v27, 0.0  ;;  %v670_v21 = vpop.permute.xlu1 %669 }
 0x110   :  { %v577_v57 = vmax.f32 %v531_v60, 0.0 }
 0x111   :  { %v575_v43 = vmax.f32 %v523_v35, 0.0  ;;  %v1601_v35 = vmov 1966171168  }
 0x112   :  { %v595_v45 = vpack.c.bf16 %v577_v57, %v576_v42  ;;  %1354 = vmatpush3.bf16.msra.mxu0 %v1939_v10  ;;  %1526 = vmatpush3.bf16.msra.mxu1 %v1939_v10  ;;  %v2081_v23 = vpop.permute.xlu0 %754  ;;  %v1204_v42 = vunpack.c.l.s4 %v1601_v35  ;;  %v1206_v57 = vlaneseq }
 0x113   :  { %v594_v36 = vpack.c.bf16 %v575_v43, %v574_v40  ;;  %v1513_v41 = vpop.f32.mrb[28].mxu0  ;;  %v2083_v28 = vpop.permute.xlu1 %759 }
 0x114   :  { %v544_v47 = vadd.f32 %v1513_v41, %v1943_v15  ;;  %v535_v37 = vpop.f32.mrb[29].mxu0  ;;  %v1205_v40 = vunpack.c.0.s8 %v1204_v42  ;;  %v1207_v43 = vshrl.u32 %v1206_v57, 7 }
 0x115   :  { %v536_v38 = vadd.f32 %v535_v37, %v1931_v54  ;;  %v1514_v48 = vpop.f32.mrb[30].mxu0  ;;  %1355 = vmatprep.subr.bf16.mxu0 %v594_v36  ;;  %1519 = vmatprep.subr.bf16.mxu1 %v594_v36 }
 0x116   :  { %v547_v12 = vadd.f32 %v1514_v48, %v1945_v22  ;;  %v538_v46 = vpop.f32.mrb[31].mxu0  ;;  %1356 = vmatpush3.bf16.msra.mxu0 %v1949_v44  ;;  %1527 = vmatpush3.bf16.msra.mxu1 %v1949_v44  ;;  %v580_v50 = vmax.f32 %v544_v47, 0.0  ;;  %v1555_v22 = vld [vmem:[%s2192_s3 + $0x50] ss:$8 sps:$4 sm:$0xff]   ;;  %v1560_v44 = vld [vmem:[%s2192_s3 + $0x64] ss:$8 sps:$4 sm:$0xff]   ;;  %v2085_v33 = vpop.permute.xlu0 %674  ;;  %v2110_v37 = vsub.s32 %v1205_v40, %v1207_v43 }
 0x117   :  { %v539_v49 = vadd.f32 %v538_v46, %v1935_v59  ;;  %1357 = vmatprep.subr.bf16.mxu0 %v595_v45  ;;  %1520 = vmatprep.subr.bf16.mxu1 %v595_v45  ;;  %v578_v15 = vmax.f32 %v536_v38, 0.0  ;;  %v1552_v59 = vld [vmem:[%s2192_s3] ss:$8 sps:$4 sm:$0xff]   ;;  %v2087_v26 = vpop.permute.xlu1 %679 }
 0x118   :  { %v581_v10 = vmax.f32 %v547_v12, 0.0  ;;  %v2102_v45 = vld.sshfl [vmem:[%s2193_s5] sm:$0x11 pattern:$0x75316420] }
 0x119   :  { %v579_v51 = vmax.f32 %v539_v49, 0.0  ;;  %v1202_v47 = vcombine.high %v2102_v45, %v2102_v45  ;;  %v1209_v38 = vrot.slane %v2102_v45, %v2110_v37 }
 0x11a   :  { %v597_v39 = vpack.c.bf16 %v581_v10, %v580_v50  ;;  %1358 = vmatpush3.bf16.msra.mxu0 %v1947_v34  ;;  %1528 = vmatpush3.bf16.msra.mxu1 %v1947_v34  ;;  %v1558_v34 = vld [vmem:[%s2192_s3 + $0x14] ss:$8 sps:$4 sm:$0xff]   ;;  %v2089_v29 = vpop.permute.xlu0 %764 }
 0x11b   :  { %v596_v54 = vpack.c.bf16 %v579_v51, %v578_v15  ;;  %v2091_v27 = vpop.permute.xlu1 %769  ;;  %v1216_v48 = vrot.slane %v1202_v47, %v2110_v37 }
 0x11d   :  { %1359 = vmatprep.subr.bf16.mxu0 %v596_v54  ;;  %1521 = vmatprep.subr.bf16.mxu1 %v596_v54 }
 0x11e   :  { %1360 = vmatpush3.bf16.msra.mxu0 %v1953_v58  ;;  %1529 = vmatpush3.bf16.msra.mxu1 %v1953_v58  ;;  %v1568_v58 = vld [vmem:[%s2192_s3 + $0x20] ss:$8 sps:$4 sm:$0xff]   ;;  %v2093_v30 = vpop.permute.xlu0 %684 }
 0x11f   :  { %1361 = vmatprep.subr.bf16.mxu0 %v597_v39  ;;  %1522 = vmatprep.subr.bf16.mxu1 %v597_v39  ;;  %v2095_v60 = vpop.permute.xlu1 %689 }
 0x122   :  { %1362 = vmatpush3.bf16.msra.mxu0 %v1951_v55  ;;  %1530 = vmatpush3.bf16.msra.mxu1 %v1951_v55  ;;  %v1564_v55 = vld [vmem:[%s2192_s3 + $0x24] ss:$8 sps:$4 sm:$0xff]   ;;  %v2097_v31 = vpop.permute.xlu0 %774 }
 0x123   :  { %v2104_v36 = vpop.permute.xlu1 %779 }
 0x125   :  { %1015 = vmatmul.mubr.bf16.vlgmr.msra.gmra.mrb[32].mxu0 %v1552_v59  ;;  %1055 = vmatmul.mubr.bf16.vlgmr.msra.gmra.mrb[0].mxu1 %v1555_v22 }
 0x126   :  { %1022 = vmatprep.mubr.bf16.mxu0 %v1558_v34  ;;  %1062 = vmatprep.mubr.bf16.mxu1 %v1560_v44  ;;  %v2106_v41 = vpop.permute.xlu0 %694 }
 0x127   :  { %v2115_v12 = vpop.permute.xlu1 %699 }
 0x12a   :  { %v2117_v46 = vpop.permute.xlu0 %784 }
 0x12b   :  { %v2119_v49 = vpop.permute.xlu1 %789 }
 0x12d   :  { %1023 = vmatmul.mubr.bf16.gmra.mrb[36].mxu0 %v1562_v52  ;;  %1063 = vmatmul.mubr.bf16.gmra.mrb[4].mxu1 %v1563_v53 }
 0x12e   :  { %1030 = vmatprep.mubr.bf16.mxu0 %v1564_v55  ;;  %1070 = vmatprep.mubr.bf16.mxu1 %v1566_v56  ;;  %v2121_v50 = vpop.permute.xlu0 %704 }
 0x12f   :  { %v2123_v10 = vpop.permute.xlu1 %709 }
 0x132   :  { %v2125_v15 = vpop.permute.xlu0 %794 }
 0x133   :  { %v2127_v51 = vpop.permute.xlu1 %799 }
 0x135   :  { %1031 = vmatmul.mubr.bf16.gmra.mrb[40].mxu0 %v1568_v58  ;;  %1071 = vmatmul.mubr.bf16.gmra.mrb[8].mxu1 %v1569_v61 }
 0x136   :  { %1038 = vmatprep.mubr.bf16.mxu0 %v1570_v62  ;;  %1078 = vmatprep.mubr.bf16.mxu1 %v1572_v63  ;;  %v715_v39 = vpop.permute.xlu0 %714 }
 0x137   :  { %v720_v54 = vpop.permute.xlu1 %719 }
 0x13a   :  { %v2129_v59 = vpop.permute.xlu0 %804 }
 0x13b   :  { %v2131_v22 = vpop.permute.xlu1 %809 }
 0x13d   :  { %1039 = vmatmul.mubr.bf16.gmra.mrb[44].mxu0 %v1574_v0  ;;  %1079 = vmatmul.mubr.bf16.gmra.mrb[12].mxu1 %v1575_v1 }
 0x13e   :  { %1046 = vmatprep.mubr.bf16.mxu0 %v1576_v2  ;;  %1086 = vmatprep.mubr.bf16.mxu1 %v1578_v3  ;;  %v725_v34 = vpop.permute.xlu0 %724 }
 0x145   :  { %1047 = vmatmul.mubr.bf16.gmra.mrb[48].mxu0 %v1580_v4  ;;  %1087 = vmatmul.mubr.bf16.gmra.mrb[16].mxu1 %v1581_v5 }
 0x146   :  { %1094 = vmatprep.mubr.bf16.mxu1 %v1582_v6  ;;  %1251 = vmatprep.mubr.bf16.mxu0 %v1216_v48 }
 0x14d   :  { %1095 = vmatmul.mubr.bf16.gmra.mrb[20].mxu1 %v1584_v7  ;;  %v730_v7 = vpop.permute.xlu1 %729 }
 0x14e   :  { %1102 = vmatprep.mubr.bf16.mxu1 %v1585_v8  ;;  %v2133_v8 = vpop.permute.xlu0 %814 }
 0x155   :  { %1103 = vmatmul.mubr.bf16.gmra.mrb[24].mxu1 %v1587_v9 }
 0x156   :  { %1110 = vmatprep.mubr.bf16.mxu1 %v1588_v11 }
 0x15d   :  { %1111 = vmatmul.mubr.bf16.gmra.mrb[28].mxu1 %v1590_v13 }
 0x15e   :  { %1118 = vmatprep.mubr.bf16.mxu1 %v1591_v14 }
 0x165   :  { %1119 = vmatmul.mubr.bf16.gmra.mrb[32].mxu1 %v1593_v24 }
 0x166   :  { %1126 = vmatprep.mubr.bf16.mxu1 %v1594_v16 }
 0x16d   :  { %1127 = vmatmul.mubr.bf16.gmra.mrb[36].mxu1 %v1596_v18 }
 0x16e   :  { %1134 = vmatprep.mubr.bf16.mxu1 %v1597_v25 }
 0x175   :  { %1135 = vmatmul.mubr.bf16.gmra.mrb[40].mxu1 %v1599_v20 }
 0x1f8   :  { %v1363_v44 = vpop.f32.mrb[32].mxu0  ;;  %v1393_v52 = vpop.f32.mrb[0].mxu1 }
 0x1f9   :  { %v1364_v53 = vpop.f32.mrb[33].mxu0  ;;  %v1394_v55 = vpop.f32.mrb[1].mxu1 }
 0x1fa   :  { %v1365_v56 = vadd.f32 %v1364_v53, %v1363_v44  ;;  %v1395_v58 = vadd.f32 %v1394_v55, %v1393_v52  ;;  %v1366_v61 = vpop.f32.mrb[34].mxu0  ;;  %v1396_v62 = vpop.f32.mrb[2].mxu1 }
 0x1fb   :  { %v1367_v63 = vpop.f32.mrb[35].mxu0  ;;  %v1397_v0 = vpop.f32.mrb[3].mxu1 }
 0x1fc   :  { %v1017_v1 = vadd.f32 %v1365_v56, %v665_v32  ;;  %v1057_v2 = vadd.f32 %v1395_v58, %v715_v39  ;;  %v1368_v3 = vadd.f32 %v1367_v63, %v1366_v61  ;;  %v1398_v4 = vadd.f32 %v1397_v0, %v1396_v62  ;;  %v2141_v53 = vpop.permute.xlu1 %819  ;;  %v735_v55 = vpop.permute.xlu0 %734 }
 0x1fe   :  { %v1020_v5 = vadd.f32 %v1368_v3, %v670_v21  ;;  %v1060_v6 = vadd.f32 %v1398_v4, %v720_v54  ;;  %v1143_v9 = vmax.f32 %v1017_v1, 0.0  ;;  %v1153_v11 = vmax.f32 %v1057_v2, 0.0 }
 0x200   :  { %v1144_v13 = vmax.f32 %v1020_v5, 0.0  ;;  %v1154_v14 = vmax.f32 %v1060_v6, 0.0  ;;  %v1369_v24 = vpop.f32.mrb[36].mxu0  ;;  %v1399_v16 = vpop.f32.mrb[4].mxu1 }
 0x201   :  { %v1370_v18 = vpop.f32.mrb[37].mxu0  ;;  %v1400_v25 = vpop.f32.mrb[5].mxu1 }
 0x202   :  { %v2135_v20 = vpack.c.bf16 %v1144_v13, %v1143_v9  ;;  %v2137_v35 = vpack.c.bf16 %v1154_v14, %v1153_v11  ;;  %v1371_v32 = vadd.f32 %v1370_v18, %v1369_v24  ;;  %v1401_v42 = vadd.f32 %v1400_v25, %v1399_v16  ;;  %v1372_v57 = vpop.f32.mrb[38].mxu0  ;;  %v1402_v21 = vpop.f32.mrb[6].mxu1 }
 0x203   :  { %v1373_v40 = vpop.f32.mrb[39].mxu0  ;;  %v1403_v43 = vpop.f32.mrb[7].mxu1 }
 0x204   :  { %v1025_v47 = vadd.f32 %v1371_v32, %v2085_v33  ;;  %v1065_v48 = vadd.f32 %v1401_v42, %v725_v34  ;;  %v1374_v39 = vadd.f32 %v1373_v40, %v1372_v57  ;;  %v1404_v54 = vadd.f32 %v1403_v43, %v1402_v21  ;;  %v740_v24 = vpop.permute.xlu1 %739 }
 0x206   :  { %v1028_v44 = vadd.f32 %v1374_v39, %v2087_v26  ;;  %v1068_v52 = vadd.f32 %v1404_v54, %v730_v7  ;;  %v1145_v56 = vmax.f32 %v1025_v47, 0.0  ;;  %v1155_v58 = vmax.f32 %v1065_v48, 0.0 }
 0x208   :  { %v1146_v61 = vmax.f32 %v1028_v44, 0.0  ;;  %v1156_v62 = vmax.f32 %v1068_v52, 0.0  ;;  %v1375_v63 = vpop.f32.mrb[40].mxu0  ;;  %v1405_v0 = vpop.f32.mrb[8].mxu1 }
 0x209   :  { %v1376_v1 = vpop.f32.mrb[41].mxu0  ;;  %v1406_v2 = vpop.f32.mrb[9].mxu1 }
 0x20a   :  { %v2143_v3 = vpack.c.bf16 %v1146_v61, %v1145_v56  ;;  %v2145_v33 = vpack.c.bf16 %v1156_v62, %v1155_v58  ;;  %v1377_v34 = vadd.f32 %v1376_v1, %v1375_v63  ;;  %v1407_v4 = vadd.f32 %v1406_v2, %v1405_v0  ;;  %v1378_v5 = vpop.f32.mrb[42].mxu0  ;;  %v1408_v26 = vpop.f32.mrb[10].mxu1 }
 0x20b   :  { %v1379_v6 = vpop.f32.mrb[43].mxu0  ;;  %v1409_v7 = vpop.f32.mrb[11].mxu1 }
 0x20c   :  { %v1033_v9 = vadd.f32 %v1377_v34, %v2093_v30  ;;  %v1073_v11 = vadd.f32 %v1407_v4, %v735_v55  ;;  %v1380_v13 = vadd.f32 %v1379_v6, %v1378_v5  ;;  %v1410_v14 = vadd.f32 %v1409_v7, %v1408_v26 }
 0x20e   :  { %v1036_v16 = vadd.f32 %v1380_v13, %v2095_v60  ;;  %v1076_v18 = vadd.f32 %v1410_v14, %v740_v24  ;;  %v1147_v25 = vmax.f32 %v1033_v9, 0.0  ;;  %v1157_v32 = vmax.f32 %v1073_v11, 0.0 }
 0x210   :  { %v1148_v42 = vmax.f32 %v1036_v16, 0.0  ;;  %v1158_v57 = vmax.f32 %v1076_v18, 0.0  ;;  %v1381_v21 = vpop.f32.mrb[44].mxu0  ;;  %v1411_v40 = vpop.f32.mrb[12].mxu1 }
 0x211   :  { %v1382_v43 = vpop.f32.mrb[45].mxu0  ;;  %v1412_v47 = vpop.f32.mrb[13].mxu1 }
 0x212   :  { %v2149_v48 = vpack.c.bf16 %v1148_v42, %v1147_v25  ;;  %v2151_v39 = vpack.c.bf16 %v1158_v57, %v1157_v32  ;;  %v1383_v30 = vadd.f32 %v1382_v43, %v1381_v21  ;;  %v1413_v54 = vadd.f32 %v1412_v47, %v1411_v40  ;;  %v1384_v44 = vpop.f32.mrb[46].mxu0  ;;  %v1414_v52 = vpop.f32.mrb[14].mxu1 }
 0x213   :  { %v1385_v55 = vpop.f32.mrb[47].mxu0  ;;  %v1415_v56 = vpop.f32.mrb[15].mxu1 }
 0x214   :  { %v1041_v60 = vadd.f32 %v1383_v30, %v2106_v41  ;;  %v1081_v58 = vadd.f32 %v1413_v54, %v2077_v17  ;;  %v1386_v61 = vadd.f32 %v1385_v55, %v1384_v44  ;;  %v1416_v62 = vadd.f32 %v1415_v56, %v1414_v52 }
 0x216   :  { %v1044_v63 = vadd.f32 %v1386_v61, %v2115_v12  ;;  %v1084_v0 = vadd.f32 %v1416_v62, %v2079_v19  ;;  %v1149_v1 = vmax.f32 %v1041_v60, 0.0  ;;  %v1159_v2 = vmax.f32 %v1081_v58, 0.0 }
 0x218   :  { %v1150_v34 = vmax.f32 %v1044_v63, 0.0  ;;  %v1160_v4 = vmax.f32 %v1084_v0, 0.0  ;;  %v1387_v5 = vpop.f32.mrb[48].mxu0  ;;  %v1417_v26 = vpop.f32.mrb[16].mxu1 }
 0x219   :  { %v1388_v6 = vpop.f32.mrb[49].mxu0  ;;  %v1418_v7 = vpop.f32.mrb[17].mxu1 }
 0x21a   :  { %v1178_v9 = vpack.c.bf16 %v1150_v34, %v1149_v1  ;;  %v1389_v11 = vadd.f32 %v1388_v6, %v1387_v5  ;;  %v1419_v13 = vadd.f32 %v1418_v7, %v1417_v26  ;;  %v1390_v41 = vpop.f32.mrb[50].mxu0  ;;  %v1420_v14 = vpop.f32.mrb[18].mxu1  ;;  %v1183_v17 = vpack.c.bf16 %v1160_v4, %v1159_v2 }
 0x21b   :  { %v1391_v24 = vpop.f32.mrb[51].mxu0  ;;  %v1421_v16 = vpop.f32.mrb[19].mxu1 }
 0x21c   :  { %v1049_v12 = vadd.f32 %v1389_v11, %v2121_v50  ;;  %v1089_v19 = vadd.f32 %v1419_v13, %v2081_v23  ;;  %v1392_v18 = vadd.f32 %v1391_v24, %v1390_v41  ;;  %v1422_v25 = vadd.f32 %v1421_v16, %v1420_v14  ;;  %1459 = vmatprep.subr.bf16.mxu0 %v1183_v17 }
 0x21d   :  { %1460 = vmatpush3.bf16.msra.mxu0 %v2135_v20 }
 0x21e   :  { %v1052_v32 = vadd.f32 %v1392_v18, %v2123_v10  ;;  %v1092_v42 = vadd.f32 %v1422_v25, %v2083_v28  ;;  %v1151_v57 = vmax.f32 %v1049_v12, 0.0  ;;  %v1161_v21 = vmax.f32 %v1089_v19, 0.0 }
 0x220   :  { %v1152_v40 = vmax.f32 %v1052_v32, 0.0  ;;  %v1162_v43 = vmax.f32 %v1092_v42, 0.0  ;;  %v1423_v47 = vpop.f32.mrb[20].mxu1 }
 0x221   :  { %v1424_v30 = vpop.f32.mrb[21].mxu1 }
 0x222   :  { %v1179_v54 = vpack.c.bf16 %v1152_v40, %v1151_v57  ;;  %v1425_v44 = vadd.f32 %v1424_v30, %v1423_v47  ;;  %v1426_v50 = vpop.f32.mrb[22].mxu1  ;;  %v1184_v52 = vpack.c.bf16 %v1162_v43, %v1161_v21 }
 0x223   :  { %v1427_v23 = vpop.f32.mrb[23].mxu1 }
 0x224   :  { %v1097_v55 = vadd.f32 %v1425_v44, %v2089_v29  ;;  %v1428_v56 = vadd.f32 %v1427_v23, %v1426_v50  ;;  %1461 = vmatprep.subr.bf16.mxu0 %v1184_v52 }
 0x225   :  { %1462 = vmatpush3.bf16.msra.mxu0 %v2143_v3 }
 0x226   :  { %v1100_v10 = vadd.f32 %v1428_v56, %v2091_v27  ;;  %v1163_v28 = vmax.f32 %v1097_v55, 0.0 }
 0x228   :  { %v1164_v20 = vmax.f32 %v1100_v10, 0.0  ;;  %v1429_v60 = vpop.f32.mrb[24].mxu1 }
 0x229   :  { %v1430_v58 = vpop.f32.mrb[25].mxu1 }
 0x22a   :  { %v1431_v61 = vadd.f32 %v1430_v58, %v1429_v60  ;;  %v1432_v62 = vpop.f32.mrb[26].mxu1  ;;  %v1185_v63 = vpack.c.bf16 %v1164_v20, %v1163_v28 }
 0x22b   :  { %v1433_v0 = vpop.f32.mrb[27].mxu1 }
 0x22c   :  { %v1105_v1 = vadd.f32 %v1431_v61, %v2097_v31  ;;  %v1434_v2 = vadd.f32 %v1433_v0, %v1432_v62  ;;  %1463 = vmatprep.subr.bf16.mxu0 %v1185_v63 }
 0x22d   :  { %1464 = vmatpush3.bf16.msra.mxu0 %v2149_v48 }
 0x22e   :  { %v1108_v29 = vadd.f32 %v1434_v2, %v2104_v36  ;;  %v1165_v34 = vmax.f32 %v1105_v1, 0.0 }
 0x230   :  { %v1166_v3 = vmax.f32 %v1108_v29, 0.0  ;;  %v1435_v4 = vpop.f32.mrb[28].mxu1 }
 0x231   :  { %v1436_v27 = vpop.f32.mrb[29].mxu1 }
 0x232   :  { %v1437_v5 = vadd.f32 %v1436_v27, %v1435_v4  ;;  %v1438_v26 = vpop.f32.mrb[30].mxu1  ;;  %v1186_v6 = vpack.c.bf16 %v1166_v3, %v1165_v34 }
 0x233   :  { %v1439_v7 = vpop.f32.mrb[31].mxu1 }
 0x234   :  { %v1113_v11 = vadd.f32 %v1437_v5, %v2117_v46  ;;  %v1440_v13 = vadd.f32 %v1439_v7, %v1438_v26  ;;  %1465 = vmatprep.subr.bf16.mxu0 %v1186_v6 }
 0x235   :  { %1466 = vmatpush3.bf16.msra.mxu0 %v1178_v9 }
 0x236   :  { %v1116_v31 = vadd.f32 %v1440_v13, %v2119_v49  ;;  %v1167_v41 = vmax.f32 %v1113_v11, 0.0 }
 0x238   :  { %v1168_v14 = vmax.f32 %v1116_v31, 0.0  ;;  %v1441_v48 = vpop.f32.mrb[32].mxu1 }
 0x239   :  { %v1442_v17 = vpop.f32.mrb[33].mxu1 }
 0x23a   :  { %v1443_v36 = vadd.f32 %v1442_v17, %v1441_v48  ;;  %v1444_v24 = vpop.f32.mrb[34].mxu1  ;;  %v1187_v16 = vpack.c.bf16 %v1168_v14, %v1167_v41 }
 0x23b   :  { %v1445_v12 = vpop.f32.mrb[35].mxu1 }
 0x23c   :  { %v1121_v19 = vadd.f32 %v1443_v36, %v2125_v15  ;;  %v1446_v18 = vadd.f32 %v1445_v12, %v1444_v24  ;;  %1467 = vmatprep.subr.bf16.mxu0 %v1187_v16 }
 0x23d   :  { %1468 = vmatpush3.bf16.msra.mxu0 %v1179_v54 }
 0x23e   :  { %v1124_v46 = vadd.f32 %v1446_v18, %v2127_v51  ;;  %v1169_v25 = vmax.f32 %v1121_v19, 0.0 }
 0x240   :  { %v1170_v32 = vmax.f32 %v1124_v46, 0.0  ;;  %v1447_v9 = vpop.f32.mrb[36].mxu1 }
 0x241   :  { %v1448_v42 = vpop.f32.mrb[37].mxu1 }
 0x242   :  { %v1449_v49 = vadd.f32 %v1448_v42, %v1447_v9  ;;  %v1450_v57 = vpop.f32.mrb[38].mxu1  ;;  %v1188_v21 = vpack.c.bf16 %v1170_v32, %v1169_v25 }
 0x243   :  { %v1451_v40 = vpop.f32.mrb[39].mxu1 }
 0x244   :  { %v1129_v43 = vadd.f32 %v1449_v49, %v2129_v59  ;;  %v1452_v47 = vadd.f32 %v1451_v40, %v1450_v57  ;;  %1469 = vmatprep.subr.bf16.mxu0 %v1188_v21 }
 0x245   :  { %1470 = vmatpush3.bf16.msra.mxu0 %v2137_v35 }
 0x246   :  { %v1132_v15 = vadd.f32 %v1452_v47, %v2131_v22  ;;  %v1171_v30 = vmax.f32 %v1129_v43, 0.0 }
 0x248   :  { %v1172_v54 = vmax.f32 %v1132_v15, 0.0  ;;  %v1453_v44 = vpop.f32.mrb[40].mxu1 }
 0x249   :  { %v1454_v51 = vpop.f32.mrb[41].mxu1 }
 0x24a   :  { %v1455_v50 = vadd.f32 %v1454_v51, %v1453_v44  ;;  %v1456_v52 = vpop.f32.mrb[42].mxu1  ;;  %v1189_v23 = vpack.c.bf16 %v1172_v54, %v1171_v30 }
 0x24b   :  { %v1457_v55 = vpop.f32.mrb[43].mxu1 }
 0x24c   :  { %v1137_v56 = vadd.f32 %v1455_v50, %v2133_v8  ;;  %v1458_v10 = vadd.f32 %v1457_v55, %v1456_v52  ;;  %1471 = vmatprep.subr.bf16.mxu0 %v1189_v23  ;;  %v1193_v8 = vstv %s2194_s6 }
 0x24d   :  { %1472 = vmatpush3.bf16.msra.mxu0 %v2145_v33 }
 0x24e   :  { %v1140_v59 = vadd.f32 %v1458_v10, %v2141_v53  ;;  %v1173_v28 = vmax.f32 %v1137_v56, 0.0 }
 0x250   :  { %v1174_v35 = vmax.f32 %v1140_v59, 0.0 }
 0x252   :  { %v1190_v20 = vpack.c.bf16 %v1174_v35, %v1173_v28 }
 0x254   :  { %1473 = vmatprep.subr.bf16.mxu0 %v1190_v20 }
 0x255   :  { %1474 = vmatpush3.bf16.msra.mxu0 %v2151_v39 }
 0x258   :  { %1252 = vmatmul.mubr.bf16.vlgmr.msra.gmra.mrb[52].mxu0 %v1209_v38 }
 0x32b   :  { %v1475_v22 = vpop.f32.mrb[52].mxu0 }
 0x32c   :  { %v1476_v60 = vpop.f32.mrb[53].mxu0 }
 0x32d   :  { %v1477_v58 = vadd.f32 %v1476_v60, %v1475_v22  ;;  %v1478_v33 = vpop.f32.mrb[54].mxu0 }
 0x32e   :  { %v1479_v61 = vpop.f32.mrb[55].mxu0 }
 0x32f   :  { %v1254_v53 = vadd.f32 %v1477_v58, %v1193_v8 }
 0x331   :  { %1259 = vst [vmem:[%s2195_s7] sm:$0x1] %v1254_v53 }

</bundles_post_ra>
